<compile_context>
chip_gen: v7x
topology: tpu7x:2x2x1
jax: 0.10.0
libtpu: 0.0.40
codegen_flags: <defaults>
</compile_context>

<pallas_src>
import functools

import jax
import jax.numpy as jnp
from jax.experimental import pallas as pl
from jax.experimental.pallas import tpu as pltpu

LANE = 128
VMEM_LIMIT_BYTES = 32 * 1024 * 1024       # safe on v5e/v6e/v7x
XW_RESIDENT_MAX_BYTES = 8 * 1024 * 1024   # cap for holding XW fully VMEM-resident
TK_MAX = 2048                             # reduction-axis tile cap (adjacency cols)


def _round_up(x: int, m: int) -> int:
    return ((x + m - 1) // m) * m


def _pick_tk(n_pad: int) -> int:
    tk = min(TK_MAX, n_pad)
    while n_pad % tk != 0:
        tk -= LANE  # n_pad is a multiple of 128, so this terminates (>= 128)
    return tk


def _pick_tiles(n: int):
    """Row tile tm, reduction tile tk, padded node count."""
    n_pad = _round_up(max(n, 1), LANE)
    if n_pad >= 512:
        n_pad = _round_up(n_pad, 256)
        tm = 256
    elif n_pad == 256:
        tm = 128  # keep >= 2 row tiles so v7x's two TensorCores both get work
    else:
        tm = n_pad
    return n_pad, tm, _pick_tk(n_pad)


# --------------------------------------------------------------------------
# Kernels
# --------------------------------------------------------------------------
def transform_kernel(x_ref, w_ref, xw_ref):
    """XW = X @ W (bf16 operands, f32 accumulation, bf16 out). W pre-transposed."""
    xw_ref[...] = jnp.dot(
        x_ref[...], w_ref[...], preferred_element_type=jnp.float32
    ).astype(xw_ref.dtype)


def fused_agg_kernel(adj_ref, xw_ref, b1_ref, w2_ref, out_ref, acc_ref, *, tk,
                     xw_resident):
    """out[row] = relu(sum_k adj[row,k] @ xw[k] + b1) @ W2   (layer-2 GEMM fused)."""
    k = pl.program_id(1)

    @pl.when(k == 0)
    def _():
        acc_ref[...] = jnp.zeros_like(acc_ref)

    if xw_resident:
        start = pl.multiple_of(k * tk, tk)
        xw = xw_ref[pl.ds(start, tk), :]
    else:
        xw = xw_ref[...]

    acc_ref[...] += jnp.dot(adj_ref[...], xw, preferred_element_type=jnp.float32)

    @pl.when(k == pl.num_programs(1) - 1)
    def _():
        h = jnp.maximum(acc_ref[...] + b1_ref[...], 0.0)
        out_ref[...] = jnp.dot(
            h.astype(w2_ref.dtype), w2_ref[...], preferred_element_type=jnp.float32
        ).astype(out_ref.dtype)


def final_agg_kernel(adj_ref, hw_ref, b2_ref, out_ref, *, tk, xw_resident):
    """out[row] = sum_k adj[row,k] @ hw[k] + b2 (accumulate directly in out_ref)."""
    k = pl.program_id(1)

    @pl.when(k == 0)
    def _():
        out_ref[...] = jnp.broadcast_to(b2_ref[...], out_ref.shape)

    if xw_resident:
        start = pl.multiple_of(k * tk, tk)
        hw = hw_ref[pl.ds(start, tk), :]
    else:
        hw = hw_ref[...]

    out_ref[...] += jnp.dot(adj_ref[...], hw, preferred_element_type=jnp.float32)


# --------------------------------------------------------------------------
# pallas_call wrappers
# --------------------------------------------------------------------------
def _feature_transform(x_bf16, w_bf16, tm):
    """[N_pad, F_pad]bf16 @ [F_pad, H_pad]bf16 -> bf16 [N_pad, H_pad]."""
    n_pad, f_pad = x_bf16.shape
    h_pad = w_bf16.shape[1]
    flops = 2 * n_pad * f_pad * h_pad
    bytes_accessed = x_bf16.size * 2 + w_bf16.size * 2 + n_pad * h_pad * 2
    return pl.pallas_call(
        transform_kernel,
        out_shape=jax.ShapeDtypeStruct((n_pad, h_pad), jnp.bfloat16),
        grid_spec=pltpu.PrefetchScalarGridSpec(
            num_scalar_prefetch=0,
            grid=(n_pad // tm,),
            in_specs=[
                pl.BlockSpec((tm, f_pad), lambda i: (i, 0)),
                pl.BlockSpec((f_pad, h_pad), lambda i: (0, 0)),  # weight resident
            ],
            out_specs=pl.BlockSpec((tm, h_pad), lambda i: (i, 0)),
        ),
        compiler_params=pltpu.CompilerParams(
            dimension_semantics=("parallel",),
            vmem_limit_bytes=VMEM_LIMIT_BYTES,
        ),
        cost_estimate=pl.CostEstimate(
            flops=int(flops), transcendentals=0, bytes_accessed=int(bytes_accessed)
        ),
    )(x_bf16, w_bf16)


def _xw_spec(n_pad, h_pad, tk, resident):
    if resident:
        return pl.BlockSpec((n_pad, h_pad), lambda i, k: (0, 0))   # DMA'd once
    return pl.BlockSpec((tk, h_pad), lambda i, k: (k, 0))          # streamed per-k


def _aggregate_fused(adj_bf16, xw_bf16, b1_p, w2_bf16, tm, tk):
    """HW2 = relu(A_hat @ XW1 + b1) @ W2, bf16 output."""
    n_pad = adj_bf16.shape[0]
    h_pad = xw_bf16.shape[1]
    resident = (n_pad * h_pad * 2) <= XW_RESIDENT_MAX_BYTES
    kernel = functools.partial(fused_agg_kernel, tk=tk, xw_resident=resident)
    flops = 2 * n_pad * n_pad * h_pad + 2 * n_pad * h_pad * h_pad
    bytes_accessed = (
        adj_bf16.size * 2
        + xw_bf16.size * 2 * (1 if resident else n_pad // tm)
        + n_pad * h_pad * 2          # bf16 output
        + w2_bf16.size * 2 + h_pad * 4
    )
    return pl.pallas_call(
        kernel,
        out_shape=jax.ShapeDtypeStruct((n_pad, h_pad), jnp.bfloat16),
        grid_spec=pltpu.PrefetchScalarGridSpec(
            num_scalar_prefetch=0,
            grid=(n_pad // tm, n_pad // tk),
            in_specs=[
                pl.BlockSpec((tm, tk), lambda i, k: (i, k)),
                _xw_spec(n_pad, h_pad, tk, resident),
                pl.BlockSpec((1, h_pad), lambda i, k: (0, 0)),       # bias resident
                pl.BlockSpec((h_pad, h_pad), lambda i, k: (0, 0)),   # W2 resident
            ],
            out_specs=pl.BlockSpec((tm, h_pad), lambda i, k: (i, 0)),
            scratch_shapes=[pltpu.VMEM((tm, h_pad), jnp.float32)],
        ),
        compiler_params=pltpu.CompilerParams(
            dimension_semantics=("parallel", "arbitrary"),
            vmem_limit_bytes=VMEM_LIMIT_BYTES,
        ),
        cost_estimate=pl.CostEstimate(
            flops=int(flops), transcendentals=0, bytes_accessed=int(bytes_accessed)
        ),
    )(adj_bf16, xw_bf16, b1_p, w2_bf16)


def _aggregate_final(adj_bf16, hw_bf16, b2_p, tm, tk):
    """out = A_hat @ HW2 + b2, f32 output, accumulated directly in the out block."""
    n_pad = adj_bf16.shape[0]
    h_pad = hw_bf16.shape[1]
    resident = (n_pad * h_pad * 2) <= XW_RESIDENT_MAX_BYTES
    kernel = functools.partial(final_agg_kernel, tk=tk, xw_resident=resident)
    flops = 2 * n_pad * n_pad * h_pad
    bytes_accessed = (
        adj_bf16.size * 2
        + hw_bf16.size * 2 * (1 if resident else n_pad // tm)
        + n_pad * h_pad * 4
        + h_pad * 4
    )
    return pl.pallas_call(
        kernel,
        out_shape=jax.ShapeDtypeStruct((n_pad, h_pad), jnp.float32),
        grid_spec=pltpu.PrefetchScalarGridSpec(
            num_scalar_prefetch=0,
            grid=(n_pad // tm, n_pad // tk),
            in_specs=[
                pl.BlockSpec((tm, tk), lambda i, k: (i, k)),
                _xw_spec(n_pad, h_pad, tk, resident),
                pl.BlockSpec((1, h_pad), lambda i, k: (0, 0)),       # bias resident
            ],
            out_specs=pl.BlockSpec((tm, h_pad), lambda i, k: (i, 0)),
        ),
        compiler_params=pltpu.CompilerParams(
            dimension_semantics=("parallel", "arbitrary"),
            vmem_limit_bytes=VMEM_LIMIT_BYTES,
        ),
        cost_estimate=pl.CostEstimate(
            flops=int(flops), transcendentals=0, bytes_accessed=int(bytes_accessed)
        ),
    )(adj_bf16, hw_bf16, b2_p)


# --------------------------------------------------------------------------
# Graph glue (plain JAX) — matches PyG gcn_norm semantics
# --------------------------------------------------------------------------
def build_normalized_adjacency(edge_index, num_nodes, n_pad=None):
    """Dense A_hat = D^{-1/2} (A + I) D^{-1/2}, optionally built directly padded.

    Matches PyG gcn_norm: duplicate (non-self-loop) edges accumulate weight,
    explicit self-loop edges are replaced by a single unit self-loop per node,
    degree is the in-degree over edge weights. Padded rows/cols stay zero.
    """
    n_pad = num_nodes if n_pad is None else n_pad
    src, dst = edge_index[0], edge_index[1]
    not_self = (src != dst).astype(jnp.float32)
    adj = jnp.zeros((n_pad, n_pad), dtype=jnp.float32)
    adj = adj.at[dst, src].add(not_self)                      # j -> i aggregation
    self_loops = jnp.zeros((n_pad,), jnp.float32).at[:num_nodes].set(1.0)
    adj = adj + jnp.diag(self_loops)                          # one self-loop / node
    deg = jnp.sum(adj, axis=1)
    d_inv_sqrt = jnp.where(deg > 0, jax.lax.rsqrt(deg), 0.0)
    return adj * d_inv_sqrt[:, None] * d_inv_sqrt[None, :]


# --------------------------------------------------------------------------
# Forward pass
# --------------------------------------------------------------------------
def gcn_forward(x, edge_index, params, *, dropout_p=0.5, training=False):
    n, f = x.shape
    h = params["w1"].shape[0]

    n_pad, tm, tk = _pick_tiles(n)
    f_pad = _round_up(f, LANE)
    h_pad = _round_up(h, LANE)

    # Normalized adjacency built straight into the padded buffer, one bf16 cast.
    adj_p = build_normalized_adjacency(edge_index, n, n_pad).astype(jnp.bfloat16)

    # bf16 MXU operands everywhere (f32 accumulation inside the kernels).
    x_p = jnp.zeros((n_pad, f_pad), jnp.bfloat16).at[:n, :f].set(
        x.astype(jnp.bfloat16))
    w1_p = jnp.zeros((f_pad, h_pad), jnp.bfloat16).at[:f, :h].set(
        params["w1"].T.astype(jnp.bfloat16))                 # pre-transposed [in,out]
    b1_p = jnp.zeros((1, h_pad), jnp.float32).at[:, :h].set(params["b1"])
    w2_p = jnp.zeros((h_pad, h_pad), jnp.bfloat16).at[:h, :h].set(
        params["w2"].T.astype(jnp.bfloat16))
    b2_p = jnp.zeros((1, h_pad), jnp.float32).at[:, :h].set(params["b2"])

    # ---- layer 1 transform: XW1 = X @ W1 (bf16) ----
    xw1 = _feature_transform(x_p, w1_p, tm)

    # ---- layer 1 aggregate + layer 2 transform, fused:
    #      HW2 = relu(A_hat @ XW1 + b1) @ W2   (bf16, no h1 HBM round trip) ----
    # F.dropout(training=False) on h1 is the identity, so fusing across it is exact.
    # TODO(synk): training-mode dropout (pltpu.prng_seed/prng_random_bits) not implemented.
    hw2 = _aggregate_fused(adj_p, xw1, b1_p, w2_p, tm, tk)

    # ---- layer 2 aggregate: out = A_hat @ HW2 + b2 ----
    out = _aggregate_final(adj_p, hw2, b2_p, tm, tk)

    return out[:n, :h]


def init_params(key, num_features: int, n_hidden: int):
    k1, k2, k3, k4 = jax.random.split(key, 4)

    def glorot(k, out_dim, in_dim):
        limit = jnp.sqrt(6.0 / (in_dim + out_dim))
        return jax.random.uniform(k, (out_dim, in_dim), jnp.float32, -limit, limit)

    # GCNConv default bias init is zeros; use small random biases here so the
    # bias-add path is actually exercised by the correctness check.
    return {
        "w1": glorot(k1, n_hidden, num_features),
        "b1": 0.1 * jax.random.normal(k3, (1, n_hidden), jnp.float32),
        "w2": glorot(k2, n_hidden, n_hidden),
        "b2": 0.1 * jax.random.normal(k4, (1, n_hidden), jnp.float32),
    }


if __name__ == "__main__":
    key = jax.random.PRNGKey(0)
    k_x, k_e, k_p = jax.random.split(key, 3)

    num_nodes = 16
    num_features = 8
    n_hidden = 32
    num_edges = 40

    # Synthetic graph: random node features and random directed edges.
    x = jax.random.normal(k_x, (num_nodes, num_features), dtype=jnp.float32)
    edge_index = jax.random.randint(k_e, (2, num_edges), 0, num_nodes, dtype=jnp.int32)

    params = init_params(k_p, num_features, n_hidden)

    out = gcn_forward(x, edge_index, params)
    out = jax.block_until_ready(out)

    # Pure-JAX f32 reference (kernels use bf16 operands -> loose tolerance).
    adj = build_normalized_adjacency(edge_index, num_nodes)
    h_ref = jnp.maximum(adj @ (x @ params["w1"].T) + params["b1"], 0.0)
    out_ref = adj @ (h_ref @ params["w2"].T) + params["b2"]

    assert out.shape == (num_nodes, n_hidden)
    assert jnp.allclose(out, out_ref, atol=5e-2, rtol=5e-2), (
        float(jnp.max(jnp.abs(out - out_ref)))
    )

    print("KERNEL_OK")
</pallas_src>

<mosaic_0001>
module attributes {stable_mosaic.version = 11 : i64} {
  func.func @transform_kernel(%arg0: i32, %arg1: memref<128x128xbf16, #tpu.memory_space<vmem>>, %arg2: memref<128x128xbf16, #tpu.memory_space<vmem>>, %arg3: memref<128x128xbf16, #tpu.memory_space<vmem>>) attributes {dimension_semantics = [#tpu.dimension_semantics<parallel>], iteration_bounds = array<i64: 1>, scalar_prefetch = 0 : i64, scratch_operands = 0 : i64, tpu.core_type = #tpu.core_type<tc>, window_params = [{transform_indices = @transform_0, window_bounds = array<i64: 128, 128>}, {pipeline_mode = #tpu.pipeline_mode<synchronous>, transform_indices = @transform_1, window_bounds = array<i64: 128, 128>}, {transform_indices = @transform_2, window_bounds = array<i64: 128, 128>}]} {
    %c0 = arith.constant 0 : index
    %c0_0 = arith.constant 0 : index
    %0 = vector.load %arg1[%c0, %c0_0] : memref<128x128xbf16, #tpu.memory_space<vmem>>, vector<128x128xbf16>
    %c0_1 = arith.constant 0 : index
    %c0_2 = arith.constant 0 : index
    %1 = vector.load %arg2[%c0_1, %c0_2] : memref<128x128xbf16, #tpu.memory_space<vmem>>, vector<128x128xbf16>
    %cst = arith.constant dense<0.000000e+00> : vector<128x128xf32>
    %2 = tpu.matmul %0, %1, %cst {dimension_numbers = #tpu.dot_dimension_numbers<[1], [0], [0], [1], [0, 0, 1, 1], [], []>} : vector<128x128xbf16>, vector<128x128xbf16>, vector<128x128xf32> -> vector<128x128xf32>
    %3 = arith.truncf %2 : vector<128x128xf32> to vector<128x128xbf16>
    %c0_3 = arith.constant 0 : index
    %c0_4 = arith.constant 0 : index
    %4 = vector.load %arg3[%c0_3, %c0_4] : memref<128x128xbf16, #tpu.memory_space<vmem>>, vector<128x128xbf16>
    tpu.vector_store %arg3[%c0_3, %c0_4], %3 {strides = array<i32>} : memref<128x128xbf16, #tpu.memory_space<vmem>>, vector<128x128xbf16>,
    return
  }
  func.func @transform_0(%arg0: i32) -> (i32, i32) {
    %c0_i32 = arith.constant 0 : i32
    %c0_i32_0 = arith.constant 0 : i32
    return %arg0, %c0_i32 : i32, i32
  }
  func.func @transform_1(%arg0: i32) -> (i32, i32) {
    %c0_i32 = arith.constant 0 : i32
    %c0_i32_0 = arith.constant 0 : i32
    %c0_i32_1 = arith.constant 0 : i32
    return %c0_i32, %c0_i32_0 : i32, i32
  }
  func.func @transform_2(%arg0: i32) -> (i32, i32) {
    %c0_i32 = arith.constant 0 : i32
    %c0_i32_0 = arith.constant 0 : i32
    return %arg0, %c0_i32 : i32, i32
  }
}

</mosaic_0001>

<bundles_post_ra>
// kernel: tpu_custom_call.1
= control target key start
LH: loop header
LB: loop body
LE: loop exit
PB: predicated region body
PF: predicated region fallthrough
CT: control target
= control target key end

     0   :  { %7 = vsyncpa [#allocation3], 0  ;;  %s681_s0 = inlined_call_operand.hbm [shape: bf16[128,128], index: 0, kind: input, shape index: {}]   ;;  %s682_s1 = inlined_call_operand.hbm [shape: bf16[128,128], index: 1, kind: input, shape index: {}]   ;;  %s683_s2 = inlined_call_operand.hbm [shape: bf16[128,128], index: 2, kind: output, shape index: {}]  }
   0x1   :  { %8 = vsyncpa [#allocation6], 0 }
   0x2   :  { %9 = vsyncpa [#allocation4], 0  ;;  %s616_s9 = smov [#allocation2]   ;;  %s544_s13 = scalar_lea.hbm %s681_s0, 1024 }
   0x3   :  { %s15_s10 = sshll.u32 %s616_s9, 4  ;;  %p545_p0 = scmp.ne.s32.totalorder %s681_s0, %s544_s13  ;;  %s16_s10 = int_to_ptr.vmem [resolvable:$true] %s15_s10 }
   0x4   :  { %p548_p1 = scmp.lt.u32.totalorder %s544_s13, %s681_s0 }
   0x6   :  { %p550_p2 = pnand %p548_p1, %p545_p0 }
   0x8   :  { %553 = shalt.err (!%p550_p2)
}
   0x9   :  { %s554_s18 = scalar_lea.vmem %s16_s10, 1024  ;;  %p559_p4 = scmp.lt.s32.totalorder %s16_s10, %s16_s10 }
   0xa   :  { %p555_p3 = scmp.ne.s32.totalorder %s16_s10, %s554_s18  ;;  %p560_p5 = scmp.lt.s32.totalorder %s554_s18, %s554_s18 }
   0xc   :  { %p561_p6 = por %p560_p5, %p559_p4 }
   0xe   :  { %p562_p7 = pnand %p561_p6, %p555_p3 }
  0x10   :  { %565 = shalt.err (!%p562_p7)
}
  0x11   :  { %s617_s19 = smov 64   ;;  %s618_s20 = smov 4  }
  0x12   :  { %21 = dma.hbm_to_vmem [thread:$0]  %s681_s0, 1024, %s16_s10, [#allocation3], %s617_s19, %s617_s19, %s618_s20  }
  0x13   :  { %s619_s23 = smov [#allocation5]   ;;  %s566_s27 = scalar_lea.hbm %s682_s1, 1024 }
  0x14   :  { %s27_s24 = sshll.u32 %s619_s23, 4  ;;  %p567_p8 = scmp.ne.s32.totalorder %s682_s1, %s566_s27  ;;  %s28_s24 = int_to_ptr.vmem [resolvable:$true] %s27_s24 }
  0x15   :  { %p570_p9 = scmp.lt.u32.totalorder %s566_s27, %s682_s1 }
  0x17   :  { %p572_p10 = pnand %p570_p9, %p567_p8 }
  0x19   :  { %575 = shalt.err (!%p572_p10)
}
  0x1a   :  { %s576_s4 = scalar_lea.vmem %s28_s24, 1024  ;;  %p581_p12 = scmp.lt.s32.totalorder %s28_s24, %s28_s24 }
  0x1b   :  { %p577_p11 = scmp.ne.s32.totalorder %s28_s24, %s576_s4  ;;  %p582_p13 = scmp.lt.s32.totalorder %s576_s4, %s576_s4 }
  0x1d   :  { %p583_p0 = por %p582_p13, %p581_p12 }
  0x1f   :  { %p584_p1 = pnand %p583_p0, %p577_p11 }
  0x21   :  { %587 = shalt.err (!%p584_p1)
}
  0x22   :  { %33 = dma.hbm_to_vmem [thread:$0]  %s682_s1, 1024, %s28_s24, [#allocation6], %s617_s19, %s617_s19, %s618_s20  }
  0x23   :  { %610 = dma.done.wait [#allocation3], 1024  }
  0x24   :  { %611 = vsyncadd [#allocation3], 4294966272 }
  0x25   :  { %612 = dma.done.wait [#allocation6], 1024  }
  0x26   :  { %613 = vsyncadd [#allocation6], 4294966272  ;;  %v528_v0 = vld [vmem:[#allocation5] sm:$0xff]   ;;  %v529_v1 = vld [vmem:[#allocation5 + $0x8] sm:$0xff]   ;;  %s620_s1 = smov [#allocation7]  }
  0x27   :  { %475 = vmatprep.subr.bf16.mxu0 %v528_v0  ;;  %507 = vmatprep.subr.bf16.mxu1 %v528_v0  ;;  %v530_v2 = vld [vmem:[#allocation5 + $0x10] sm:$0xff]   ;;  %v531_v3 = vld [vmem:[#allocation5 + $0x18] sm:$0xff]   ;;  %v536_v4 = vld [vmem:[#allocation2] sm:$0xff]   ;;  %s351_s6 = sshll.u32 %s620_s1, 4  ;;  %s352_s6 = int_to_ptr.vmem [resolvable:$true] %s351_s6 }
  0x28   :  { %476 = vmatpush3.bf16.msra.mxu0 %v528_v0  ;;  %515 = vmatpush3.bf16.msra.mxu1 %v528_v0  ;;  %v537_v5 = vld [vmem:[#allocation2 + $0x20] sm:$0xff]   ;;  %v533_v7 = vld [vmem:[#allocation5 + $0x28] sm:$0xff]   ;;  %v534_v8 = vld [vmem:[#allocation5 + $0x30] sm:$0xff]   ;;  %s588_s7 = scalar_lea.vmem %s352_s6, 1024  ;;  %p593_p3 = scmp.lt.s32.totalorder %s352_s6, %s352_s6 }
  0x29   :  { %477 = vmatprep.subr.bf16.mxu0 %v529_v1  ;;  %508 = vmatprep.subr.bf16.mxu1 %v529_v1  ;;  %v532_v6 = vld [vmem:[#allocation5 + $0x20] sm:$0xff]   ;;  %v535_v9 = vld [vmem:[#allocation5 + $0x38] sm:$0xff]   ;;  %v538_v10 = vld [vmem:[#allocation2 + $0x8] sm:$0xff]   ;;  %p589_p2 = scmp.ne.s32.totalorder %s352_s6, %s588_s7  ;;  %p594_p4 = scmp.lt.s32.totalorder %s588_s7, %s588_s7 }
  0x2a   :  { %491 = vmatprep.mubr.bf16.mxu0 %v536_v4  ;;  %499 = vmatprep.mubr.bf16.mxu1 %v537_v5  ;;  %v539_v11 = vld [vmem:[#allocation2 + $0x28] sm:$0xff]   ;;  %v540_v12 = vld [vmem:[#allocation2 + $0x10] sm:$0xff]   ;;  %v542_v14 = vld [vmem:[#allocation2 + $0x18] sm:$0xff]  }
  0x2b   :  { %v541_v13 = vld [vmem:[#allocation2 + $0x30] sm:$0xff]   ;;  %v543_v15 = vld [vmem:[#allocation2 + $0x38] sm:$0xff]   ;;  %p595_p5 = por %p594_p4, %p593_p3 }
  0x2c   :  { %478 = vmatpush3.bf16.msra.mxu0 %v529_v1  ;;  %516 = vmatpush3.bf16.msra.mxu1 %v529_v1 }
  0x2d   :  { %479 = vmatprep.subr.bf16.mxu0 %v530_v2  ;;  %509 = vmatprep.subr.bf16.mxu1 %v530_v2  ;;  %p596_p6 = pnand %p595_p5, %p589_p2 }
  0x30   :  { %480 = vmatpush3.bf16.msra.mxu0 %v530_v2  ;;  %517 = vmatpush3.bf16.msra.mxu1 %v530_v2 }
  0x31   :  { %481 = vmatprep.subr.bf16.mxu0 %v531_v3  ;;  %510 = vmatprep.subr.bf16.mxu1 %v531_v3 }
  0x34   :  { %482 = vmatpush3.bf16.msra.mxu0 %v531_v3  ;;  %518 = vmatpush3.bf16.msra.mxu1 %v531_v3 }
  0x35   :  { %483 = vmatprep.subr.bf16.mxu0 %v532_v6  ;;  %511 = vmatprep.subr.bf16.mxu1 %v532_v6 }
  0x38   :  { %484 = vmatpush3.bf16.msra.mxu0 %v532_v6  ;;  %519 = vmatpush3.bf16.msra.mxu1 %v532_v6 }
  0x39   :  { %485 = vmatprep.subr.bf16.mxu0 %v533_v7  ;;  %512 = vmatprep.subr.bf16.mxu1 %v533_v7 }
  0x3c   :  { %486 = vmatpush3.bf16.msra.mxu0 %v533_v7  ;;  %520 = vmatpush3.bf16.msra.mxu1 %v533_v7 }
  0x3d   :  { %487 = vmatprep.subr.bf16.mxu0 %v534_v8  ;;  %513 = vmatprep.subr.bf16.mxu1 %v534_v8 }
  0x40   :  { %488 = vmatpush3.bf16.msra.mxu0 %v534_v8  ;;  %521 = vmatpush3.bf16.msra.mxu1 %v534_v8 }
  0x41   :  { %489 = vmatprep.subr.bf16.mxu0 %v535_v9  ;;  %514 = vmatprep.subr.bf16.mxu1 %v535_v9 }
  0x44   :  { %490 = vmatpush3.bf16.msra.mxu0 %v535_v9  ;;  %522 = vmatpush3.bf16.msra.mxu1 %v535_v9 }
  0x47   :  { %492 = vmatmul.mubr.bf16.vlgmr.msra.gmra.mrb[0].mxu0 %v538_v10  ;;  %500 = vmatmul.mubr.bf16.vlgmr.msra.gmra.mrb[0].mxu1 %v539_v11 }
  0x48   :  { %495 = vmatprep.mubr.bf16.mxu0 %v540_v12  ;;  %503 = vmatprep.mubr.bf16.mxu1 %v541_v13 }
  0x4f   :  { %496 = vmatmul.mubr.bf16.gmra.mrb[4].mxu0 %v542_v14  ;;  %504 = vmatmul.mubr.bf16.gmra.mrb[4].mxu1 %v543_v15 }
 0x11a   :  { %v493_v16 = vpop.f32.mrb[0].mxu0  ;;  %v501_v17 = vpop.f32.mrb[0].mxu1 }
 0x11b   :  { %v203_v18 = vpop.f32.mrb[1].mxu0  ;;  %v235_v19 = vpop.f32.mrb[1].mxu1 }
 0x11c   :  { %v494_v20 = vpop.f32.mrb[2].mxu0  ;;  %v502_v21 = vpop.f32.mrb[2].mxu1 }
 0x11d   :  { %v420_v22 = vpack.c.bf16 %v494_v20, %v493_v16  ;;  %v440_v23 = vpack.c.bf16 %v502_v21, %v501_v17  ;;  %v206_v24 = vpop.f32.mrb[3].mxu0  ;;  %v238_v25 = vpop.f32.mrb[3].mxu1 }
 0x11e   :  { %v415_v26 = vpack.c.bf16 %v206_v24, %v203_v18  ;;  %v435_v27 = vpack.c.bf16 %v238_v25, %v235_v19 }
 0x11f   :  { %452 = vst [vmem:[#allocation7 + $0x8] sm:$0xff] %v420_v22   ;;  %456 = vst [vmem:[#allocation7 + $0x28] sm:$0xff] %v440_v23  }
 0x120   :  { %416 = vst [vmem:[#allocation7] sm:$0xff] %v415_v26   ;;  %455 = vst [vmem:[#allocation7 + $0x20] sm:$0xff] %v435_v27  }
 0x122   :  { %v497_v28 = vpop.f32.mrb[4].mxu0  ;;  %v505_v29 = vpop.f32.mrb[4].mxu1 }
 0x123   :  { %v219_v30 = vpop.f32.mrb[5].mxu0  ;;  %v251_v31 = vpop.f32.mrb[5].mxu1 }
 0x124   :  { %v498_v32 = vpop.f32.mrb[6].mxu0  ;;  %v506_v33 = vpop.f32.mrb[6].mxu1 }
 0x125   :  { %v430_v34 = vpack.c.bf16 %v498_v32, %v497_v28  ;;  %v450_v35 = vpack.c.bf16 %v506_v33, %v505_v29  ;;  %v222_v36 = vpop.f32.mrb[7].mxu0  ;;  %v254_v37 = vpop.f32.mrb[7].mxu1 }
 0x126   :  { %v425_v38 = vpack.c.bf16 %v222_v36, %v219_v30  ;;  %v445_v39 = vpack.c.bf16 %v254_v37, %v251_v31 }
 0x127   :  { %454 = vst [vmem:[#allocation7 + $0x18] sm:$0xff] %v430_v34   ;;  %458 = vst [vmem:[#allocation7 + $0x38] sm:$0xff] %v450_v35  }
 0x128   :  { %453 = vst [vmem:[#allocation7 + $0x10] sm:$0xff] %v425_v38   ;;  %457 = vst [vmem:[#allocation7 + $0x30] sm:$0xff] %v445_v39  }
 0x129   :  { %599 = shalt.err (!%p596_p6)
}
 0x12a   :  { %s600_s10 = scalar_lea.hbm %s683_s2, 1024 }
 0x12b   :  { %p601_p7 = scmp.ne.s32.totalorder %s683_s2, %s600_s10  ;;  %p604_p8 = scmp.lt.u32.totalorder %s600_s10, %s683_s2 }
 0x12d   :  { %p606_p9 = pnand %p604_p8, %p601_p7 }
 0x12f   :  { %609 = shalt.err (!%p606_p9)
}
 0x130   :  { %357 = dma.vmem_to_hbm [thread:$0]  %s352_s6, 1024, %s683_s2, [#allocation4], %s617_s19, %s617_s19, %s618_s20  }
 0x131   :  { %614 = dma.done.wait [#allocation4], 1024  }
 0x132   :  { %615 = vsyncadd [#allocation4], 4294966272 }
 0x133   :  { %361 = vsyncpa [#allocation3], 1 }
 0x134   :  { %362 = vsyncpa [#allocation6], 1 }
 0x135   :  { %363 = vsyncpa [#allocation4], 1 }

</bundles_post_ra>
